<compile_context>
chip_gen: v5e
topology: v5e:2x2
jax: 0.10.0
libtpu: 0.0.40
codegen_flags: <defaults>
</compile_context>

<pallas_src>
import functools
import math

import jax
import jax.numpy as jnp
from jax.experimental import pallas as pl
from jax.experimental.pallas import tpu as pltpu


def _round_up(x, m):
    return ((x + m - 1) // m) * m


# ---------------------------------------------------------------------------
# Kernel: fused chain of (x @ W_scaled + b_scaled) -> LeakyReLU
# ---------------------------------------------------------------------------
def _mapping_kernel(x_ref, w_ref, b_ref, o_ref, *, n_layers, leak):
    """x_ref: (TILE_N, D_PAD)   activation tile (zero-padded lanes)
    w_ref: (L, D_PAD, D_PAD) stacked pre-transposed, pre-scaled weights
    b_ref: (L, 1, D_PAD)     stacked pre-scaled biases
    o_ref: (TILE_N, D_PAD)   output tile
    """
    h = x_ref[...]
    # L is tiny (e.g. 3) and static: unrolled loop, activations stay resident.
    for l in range(n_layers):
        y = jnp.dot(h, w_ref[l], preferred_element_type=jnp.float32) + b_ref[l]
        h = jnp.maximum(y, leak * y)  # LeakyReLU(leak), leak < 1
    o_ref[...] = h.astype(o_ref.dtype)


# ---------------------------------------------------------------------------
# One-time parameter packing (glue, NOT in the per-forward path)
# ---------------------------------------------------------------------------
def init_mapping_params(key, dim_in, dim_latent, n_layers, lr_mul=0.01):
    """Raw params matching EqualizedLinear.__init__ (PyTorch (dout, din) layout)."""
    params = []
    in_dim = dim_in
    for _ in range(n_layers):
        key, wkey = jax.random.split(key)
        w = jax.random.normal(wkey, (dim_latent, in_dim), dtype=jnp.float32) / lr_mul
        b = jnp.zeros((dim_latent,), dtype=jnp.float32)  # initBiasToZero=True
        params.append((w, b))
        in_dim = dim_latent
    return params


def pack_mapping_params(params, *, lr_mul=0.01, d_pad=None):
    """Transpose, fold the equalized-LR scale into W and b, zero-pad to a
    lane-dense width, and stack all layers.  Done ONCE outside the forward."""
    dims = [p[0].shape[1] for p in params] + [params[-1][0].shape[0]]
    if d_pad is None:
        d_pad = _round_up(max(dims), 128)  # lane-dense: multiple of 128
    ws, bs = [], []
    for w, b in params:
        dout, din = w.shape
        scale = lr_mul * math.sqrt(2.0 / din)  # He const * lrMul
        wt = (w.T * scale).astype(jnp.float32)  # (din, dout), scale folded in
        bt = (b * scale).astype(jnp.float32)    # (dout,),     scale folded in
        ws.append(jnp.zeros((d_pad, d_pad), jnp.float32).at[:din, :dout].set(wt))
        bs.append(jnp.zeros((1, d_pad), jnp.float32).at[0, :dout].set(bt))
    return jnp.stack(ws), jnp.stack(bs), d_pad


# ---------------------------------------------------------------------------
# Forward
# ---------------------------------------------------------------------------
@functools.partial(jax.jit, static_argnames=("dim_latent", "leak", "tile_n"))
def mapping_layer_forward(x, w_stack, b_stack, *, dim_latent, leak=0.2, tile_n=512):
    """MappingLayer forward: chain of EqualizedLinear + LeakyReLU, one kernel."""
    n, din = x.shape
    n_layers, d_pad, _ = w_stack.shape

    tile = min(tile_n, _round_up(n, 8))      # sublane-aligned batch tile
    n_pad = _round_up(n, tile)

    # Zero-pad batch rows and feature lanes (exactness argued above).
    x_p = jnp.zeros((n_pad, d_pad), jnp.float32).at[:n, :din].set(x)

    kernel = functools.partial(_mapping_kernel, n_layers=n_layers, leak=leak)

    out = pl.pallas_call(
        kernel,
        out_shape=jax.ShapeDtypeStruct((n_pad, d_pad), jnp.float32),
        grid=(n_pad // tile,),
        in_specs=[
            pl.BlockSpec((tile, d_pad), lambda i: (i, 0)),
            # Weights/biases: same block every grid step -> stay VMEM-resident.
            pl.BlockSpec((n_layers, d_pad, d_pad), lambda i: (0, 0, 0)),
            pl.BlockSpec((n_layers, 1, d_pad), lambda i: (0, 0, 0)),
        ],
        out_specs=pl.BlockSpec((tile, d_pad), lambda i: (i, 0)),
        compiler_params=pltpu.CompilerParams(
            dimension_semantics=("parallel",)),  # shard rows across TCs (v7x)
    )(x_p, w_stack, b_stack)

    return out[:n, :dim_latent]


# ---------------------------------------------------------------------------
# Pure-JAX reference (faithful to the PyTorch module)
# ---------------------------------------------------------------------------
def _reference_forward(x, params, *, lr_mul=0.01, leak=0.2):
    for w, b in params:
        scale = lr_mul * math.sqrt(2.0 / w.shape[1])
        y = (x @ w.T + b) * scale
        x = jnp.where(y >= 0, y, leak * y)
    return x


if __name__ == "__main__":
    # Small shapes consistent with the module: batch=8, dimIn=32, dimLatent=32, nLayers=3.
    batch, dim_in, dim_latent, n_layers = 8, 32, 32, 3
    lr_mul, leak = 0.01, 0.2

    key = jax.random.PRNGKey(0)
    key, xkey, pkey, bkey = jax.random.split(key, 4)

    x = jax.random.normal(xkey, (batch, dim_in), dtype=jnp.float32)
    params = init_mapping_params(pkey, dim_in, dim_latent, n_layers, lr_mul=lr_mul)

    # Pack once (transpose + scale-fold + pad + stack), then run fused kernel.
    w_stack, b_stack, _ = pack_mapping_params(params, lr_mul=lr_mul)
    out = mapping_layer_forward(x, w_stack, b_stack, dim_latent=dim_latent, leak=leak)
    out = jax.block_until_ready(out)

    ref = _reference_forward(x, params, lr_mul=lr_mul, leak=leak)
    assert out.shape == (batch, dim_latent)
    assert jnp.allclose(out, ref, atol=1e-4, rtol=1e-4), "Pallas kernel mismatch vs reference"

    # Extra check with nonzero biases to validate the bias-scale folding path
    # (biases become nonzero after training in the real module).
    bkeys = jax.random.split(bkey, n_layers)
    params_nz = [(w, jax.random.normal(k, b.shape, dtype=jnp.float32))
                 for (w, b), k in zip(params, bkeys)]
    w_nz, b_nz, _ = pack_mapping_params(params_nz, lr_mul=lr_mul)
    out_nz = jax.block_until_ready(
        mapping_layer_forward(x, w_nz, b_nz, dim_latent=dim_latent, leak=leak))
    ref_nz = _reference_forward(x, params_nz, lr_mul=lr_mul, leak=leak)
    assert jnp.allclose(out_nz, ref_nz, atol=1e-4, rtol=1e-4), "bias-fold mismatch"

    print("KERNEL_OK")
</pallas_src>

<mosaic_0001>
module attributes {stable_mosaic.version = 11 : i64} {
  func.func @_mapping_kernel(%arg0: i32, %arg1: memref<8x128xf32, #tpu.memory_space<vmem>>, %arg2: memref<3x128x128xf32, #tpu.memory_space<vmem>>, %arg3: memref<3x1x128xf32, #tpu.memory_space<vmem>>, %arg4: memref<8x128xf32, #tpu.memory_space<vmem>>) attributes {dimension_semantics = [#tpu.dimension_semantics<parallel>], iteration_bounds = array<i64: 1>, scalar_prefetch = 0 : i64, scratch_operands = 0 : i64, tpu.core_type = #tpu.core_type<tc>, window_params = [{transform_indices = @transform_0, window_bounds = array<i64: 8, 128>}, {pipeline_mode = #tpu.pipeline_mode<synchronous>, transform_indices = @transform_1, window_bounds = array<i64: 3, 128, 128>}, {pipeline_mode = #tpu.pipeline_mode<synchronous>, transform_indices = @transform_2, window_bounds = array<i64: 3, 1, 128>}, {transform_indices = @transform_3, window_bounds = array<i64: 8, 128>}]} {
    %c0 = arith.constant 0 : index
    %c0_0 = arith.constant 0 : index
    %0 = vector.load %arg1[%c0, %c0_0] : memref<8x128xf32, #tpu.memory_space<vmem>>, vector<8x128xf32>
    %c0_1 = arith.constant 0 : index
    %c0_2 = arith.constant 0 : index
    %c0_3 = arith.constant 0 : index
    %1 = vector.load %arg2[%c0_1, %c0_2, %c0_3] : memref<3x128x128xf32, #tpu.memory_space<vmem>>, vector<1x128x128xf32>
    %2 = vector.shape_cast %1 : vector<1x128x128xf32> to vector<128x128xf32>
    %cst = arith.constant dense<0.000000e+00> : vector<8x128xf32>
    %3 = tpu.matmul %0, %2, %cst {dimension_numbers = #tpu.dot_dimension_numbers<[1], [0], [0], [1], [0, 0, 1, 1], [], []>} : vector<8x128xf32>, vector<128x128xf32>, vector<8x128xf32> -> vector<8x128xf32>
    %c0_4 = arith.constant 0 : index
    %c0_5 = arith.constant 0 : index
    %c0_6 = arith.constant 0 : index
    %4 = vector.load %arg3[%c0_4, %c0_5, %c0_6] : memref<3x1x128xf32, #tpu.memory_space<vmem>>, vector<1x1x128xf32>
    %5 = vector.shape_cast %4 : vector<1x1x128xf32> to vector<1x128xf32>
    %6 = vector.broadcast %5 : vector<1x128xf32> to vector<8x128xf32>
    %7 = arith.addf %3, %6 : vector<8x128xf32>
    %cst_7 = arith.constant 2.000000e-01 : f32
    %8 = vector.broadcast %cst_7 : f32 to vector<8x128xf32>
    %9 = arith.mulf %8, %7 : vector<8x128xf32>
    %10 = arith.maximumf %7, %9 : vector<8x128xf32>
    %c1 = arith.constant 1 : index
    %c0_8 = arith.constant 0 : index
    %c0_9 = arith.constant 0 : index
    %11 = vector.load %arg2[%c1, %c0_8, %c0_9] : memref<3x128x128xf32, #tpu.memory_space<vmem>>, vector<1x128x128xf32>
    %12 = vector.shape_cast %11 : vector<1x128x128xf32> to vector<128x128xf32>
    %cst_10 = arith.constant dense<0.000000e+00> : vector<8x128xf32>
    %13 = tpu.matmul %10, %12, %cst_10 {dimension_numbers = #tpu.dot_dimension_numbers<[1], [0], [0], [1], [0, 0, 1, 1], [], []>} : vector<8x128xf32>, vector<128x128xf32>, vector<8x128xf32> -> vector<8x128xf32>
    %c1_11 = arith.constant 1 : index
    %c0_12 = arith.constant 0 : index
    %c0_13 = arith.constant 0 : index
    %14 = vector.load %arg3[%c1_11, %c0_12, %c0_13] : memref<3x1x128xf32, #tpu.memory_space<vmem>>, vector<1x1x128xf32>
    %15 = vector.shape_cast %14 : vector<1x1x128xf32> to vector<1x128xf32>
    %16 = vector.broadcast %15 : vector<1x128xf32> to vector<8x128xf32>
    %17 = arith.addf %13, %16 : vector<8x128xf32>
    %cst_14 = arith.constant 2.000000e-01 : f32
    %18 = vector.broadcast %cst_14 : f32 to vector<8x128xf32>
    %19 = arith.mulf %18, %17 : vector<8x128xf32>
    %20 = arith.maximumf %17, %19 : vector<8x128xf32>
    %c2 = arith.constant 2 : index
    %c0_15 = arith.constant 0 : index
    %c0_16 = arith.constant 0 : index
    %21 = vector.load %arg2[%c2, %c0_15, %c0_16] : memref<3x128x128xf32, #tpu.memory_space<vmem>>, vector<1x128x128xf32>
    %22 = vector.shape_cast %21 : vector<1x128x128xf32> to vector<128x128xf32>
    %cst_17 = arith.constant dense<0.000000e+00> : vector<8x128xf32>
    %23 = tpu.matmul %20, %22, %cst_17 {dimension_numbers = #tpu.dot_dimension_numbers<[1], [0], [0], [1], [0, 0, 1, 1], [], []>} : vector<8x128xf32>, vector<128x128xf32>, vector<8x128xf32> -> vector<8x128xf32>
    %c2_18 = arith.constant 2 : index
    %c0_19 = arith.constant 0 : index
    %c0_20 = arith.constant 0 : index
    %24 = vector.load %arg3[%c2_18, %c0_19, %c0_20] : memref<3x1x128xf32, #tpu.memory_space<vmem>>, vector<1x1x128xf32>
    %25 = vector.shape_cast %24 : vector<1x1x128xf32> to vector<1x128xf32>
    %26 = vector.broadcast %25 : vector<1x128xf32> to vector<8x128xf32>
    %27 = arith.addf %23, %26 : vector<8x128xf32>
    %cst_21 = arith.constant 2.000000e-01 : f32
    %28 = vector.broadcast %cst_21 : f32 to vector<8x128xf32>
    %29 = arith.mulf %28, %27 : vector<8x128xf32>
    %30 = arith.maximumf %27, %29 : vector<8x128xf32>
    %c0_22 = arith.constant 0 : index
    %c0_23 = arith.constant 0 : index
    %31 = vector.load %arg4[%c0_22, %c0_23] : memref<8x128xf32, #tpu.memory_space<vmem>>, vector<8x128xf32>
    tpu.vector_store %arg4[%c0_22, %c0_23], %30 {strides = array<i32>} : memref<8x128xf32, #tpu.memory_space<vmem>>, vector<8x128xf32>,
    return
  }
  func.func @transform_0(%arg0: i32) -> (i32, i32) {
    %c0_i32 = arith.constant 0 : i32
    %c0_i32_0 = arith.constant 0 : i32
    return %arg0, %c0_i32 : i32, i32
  }
  func.func @transform_1(%arg0: i32) -> (i32, i32, i32) {
    %c0_i32 = arith.constant 0 : i32
    %c0_i32_0 = arith.constant 0 : i32
    %c0_i32_1 = arith.constant 0 : i32
    %c0_i32_2 = arith.constant 0 : i32
    return %c0_i32, %c0_i32_0, %c0_i32_1 : i32, i32, i32
  }
  func.func @transform_2(%arg0: i32) -> (i32, i32, i32) {
    %c0_i32 = arith.constant 0 : i32
    %c0_i32_0 = arith.constant 0 : i32
    %c0_i32_1 = arith.constant 0 : i32
    %c0_i32_2 = arith.constant 0 : i32
    return %c0_i32, %c0_i32_0, %c0_i32_1 : i32, i32, i32
  }
  func.func @transform_3(%arg0: i32) -> (i32, i32) {
    %c0_i32 = arith.constant 0 : i32
    %c0_i32_0 = arith.constant 0 : i32
    return %arg0, %c0_i32 : i32, i32
  }
}

</mosaic_0001>

<bundles_post_ra>
// kernel: mapping_layer_forward.1
= control target key start
LH: loop header
LB: loop body
LE: loop exit
PB: predicated region body
PF: predicated region fallthrough
CT: control target
= control target key end

     0   :  { %8 = vsyncpa [#allocation3], 0  ;;  %s283_s0 = inlined_call_operand.vmem [shape: f32[8,128], index: 0, kind: input, shape index: {}]   ;;  %s284_s1 = inlined_call_operand.hbm [shape: f32[3,128,128], index: 1, kind: input, shape index: {}]   ;;  %s285_s2 = inlined_call_operand.vmem [shape: f32[3,1,128], index: 2, kind: input, shape index: {}]   ;;  %s286_s3 = inlined_call_operand.hbm [shape: f32[8,128], index: 3, kind: output, shape index: {}]  }
   0x1   :  { %9 = vsyncpa [#allocation4], 0  ;;  %s16_s14 = sshll.u32 %s284_s1, 4  ;;  %s241_s15 = smov [#allocation2]   ;;  %s17_s14 = int_to_ptr.hbm [resolvable:$true] %s16_s14 }
   0x2   :  { %s18_s16 = sshll.u32 %s241_s15, 4  ;;  %s242_s17 = smov 128   ;;  %s19_s16 = int_to_ptr.vmem [resolvable:$true] %s18_s16 }
   0x3   :  { %s243_s18 = smov 8  }
   0x4   :  { %24 = dma.hbm_to_vmem [thread:$0]  %s17_s14, 6144, %s19_s16, [#allocation3], %s242_s17, %s242_s17, %s243_s18  }
   0x5   :  { %237 = dma.done.wait [#allocation3], 6144  }
   0x6   :  { %238 = vsyncadd [#allocation3], 4294961152  ;;  %v47_v0 = vld [vmem:[#allocation2 + $0x78] sm:$0xff]  ;;  %v46_v1 = vld [vmem:[#allocation2 + $0x70] sm:$0xff]  ;;  %s244_s25 = smov [#allocation5]   ;;  %s170_s29 = sshll.u32 %s286_s3, 4  ;;  %s171_s29 = int_to_ptr.hbm [resolvable:$true] %s170_s29 }
   0x7   :  { %52 = vmatpush.msra.mxu0 %v47_v0  ;;  %v45_v2 = vld [vmem:[#allocation2 + $0x68] sm:$0xff]  ;;  %v44_v3 = vld [vmem:[#allocation2 + $0x60] sm:$0xff]  ;;  %v90_v4 = vld [vmem:[#allocation2 + $0xf8] sm:$0xff]  ;;  %s168_s26 = sshll.u32 %s244_s25, 4  ;;  %s169_s26 = int_to_ptr.vmem [resolvable:$true] %s168_s26 }
   0x8   :  { %v43_v5 = vld [vmem:[#allocation2 + $0x58] sm:$0xff]  ;;  %96 = vmatpush.msra.mxu1 %v90_v4  ;;  %v89_v6 = vld [vmem:[#allocation2 + $0xf0] sm:$0xff]  ;;  %v88_v7 = vld [vmem:[#allocation2 + $0xe8] sm:$0xff] }
   0x9   :  { %53 = vmatpush.msra.mxu0 %v46_v1  ;;  %v42_v8 = vld [vmem:[#allocation2 + $0x50] sm:$0xff]  ;;  %v87_v9 = vld [vmem:[#allocation2 + $0xe0] sm:$0xff]  ;;  %v41_v10 = vld [vmem:[#allocation2 + $0x48] sm:$0xff] }
   0xa   :  { %97 = vmatpush.msra.mxu1 %v89_v6  ;;  %v86_v11 = vld [vmem:[#allocation2 + $0xd8] sm:$0xff]  ;;  %v40_v12 = vld [vmem:[#allocation2 + $0x40] sm:$0xff]  ;;  %v85_v13 = vld [vmem:[#allocation2 + $0xd0] sm:$0xff] }
   0xb   :  { %54 = vmatpush.msra.mxu0 %v45_v2  ;;  %v39_v14 = vld [vmem:[#allocation2 + $0x38] sm:$0xff]  ;;  %v84_v15 = vld [vmem:[#allocation2 + $0xc8] sm:$0xff]  ;;  %v38_v16 = vld [vmem:[#allocation2 + $0x30] sm:$0xff] }
   0xc   :  { %98 = vmatpush.msra.mxu1 %v88_v7  ;;  %v83_v17 = vld [vmem:[#allocation2 + $0xc0] sm:$0xff]  ;;  %v37_v18 = vld [vmem:[#allocation2 + $0x28] sm:$0xff]  ;;  %v82_v19 = vld [vmem:[#allocation2 + $0xb8] sm:$0xff] }
   0xd   :  { %55 = vmatpush.msra.mxu0 %v44_v3  ;;  %v36_v20 = vld [vmem:[#allocation2 + $0x20] sm:$0xff]  ;;  %v81_v21 = vld [vmem:[#allocation2 + $0xb0] sm:$0xff]  ;;  %v35_v22 = vld [vmem:[#allocation2 + $0x18] sm:$0xff] }
   0xe   :  { %99 = vmatpush.msra.mxu1 %v87_v9  ;;  %v80_v23 = vld [vmem:[#allocation2 + $0xa8] sm:$0xff]  ;;  %v34_v24 = vld [vmem:[#allocation2 + $0x10] sm:$0xff]  ;;  %v79_v25 = vld [vmem:[#allocation2 + $0xa0] sm:$0xff] }
   0xf   :  { %56 = vmatpush.msra.mxu0 %v43_v5  ;;  %v33_v26 = vld [vmem:[#allocation2 + $0x8] sm:$0xff]  ;;  %v32_v27 = vld [vmem:[#allocation2] sm:$0xff]  ;;  %v78_v29 = vld [vmem:[#allocation2 + $0x98] sm:$0xff] }
  0x10   :  { %100 = vmatpush.msra.mxu1 %v86_v11  ;;  %v31_v28 = vld [vmem:[%s283_s0] sm:$0xff]  ;;  %v77_v30 = vld [vmem:[#allocation2 + $0x90] sm:$0xff]  ;;  %v76_v31 = vld [vmem:[#allocation2 + $0x88] sm:$0xff] }
  0x11   :  { %57 = vmatpush.msra.mxu0 %v42_v8  ;;  %v75_v32 = vld [vmem:[#allocation2 + $0x80] sm:$0xff]  ;;  %v134_v33 = vld [vmem:[#allocation2 + $0x178] sm:$0xff]  ;;  %v133_v34 = vld [vmem:[#allocation2 + $0x170] sm:$0xff] }
  0x12   :  { %101 = vmatpush.msra.mxu1 %v85_v13  ;;  %140 = vmatpush.msra.mxu2 %v134_v33  ;;  %v132_v35 = vld [vmem:[#allocation2 + $0x168] sm:$0xff]  ;;  %v131_v36 = vld [vmem:[#allocation2 + $0x160] sm:$0xff]  ;;  %v130_v37 = vld [vmem:[#allocation2 + $0x158] sm:$0xff] }
  0x13   :  { %58 = vmatpush.msra.mxu0 %v41_v10  ;;  %v129_v38 = vld [vmem:[#allocation2 + $0x150] sm:$0xff]  ;;  %v128_v39 = vld [vmem:[#allocation2 + $0x148] sm:$0xff]  ;;  %v127_v40 = vld [vmem:[#allocation2 + $0x140] sm:$0xff] }
  0x14   :  { %102 = vmatpush.msra.mxu1 %v84_v15  ;;  %141 = vmatpush.msra.mxu2 %v133_v34  ;;  %v126_v41 = vld [vmem:[#allocation2 + $0x138] sm:$0xff]  ;;  %v125_v42 = vld [vmem:[#allocation2 + $0x130] sm:$0xff]  ;;  %v124_v43 = vld [vmem:[#allocation2 + $0x128] sm:$0xff] }
  0x15   :  { %59 = vmatpush.msra.mxu0 %v40_v12  ;;  %v123_v44 = vld [vmem:[#allocation2 + $0x120] sm:$0xff]  ;;  %v122_v50 = vld [vmem:[#allocation2 + $0x118] sm:$0xff]  ;;  %v121_v51 = vld [vmem:[#allocation2 + $0x110] sm:$0xff] }
  0x16   :  { %103 = vmatpush.msra.mxu1 %v83_v17  ;;  %142 = vmatpush.msra.mxu2 %v132_v35  ;;  %v186_v45 = vld [vmem:[%s285_s2] ss:$0 sm:$0xff]  ;;  %v120_v52 = vld [vmem:[#allocation2 + $0x108] sm:$0xff]  ;;  %v187_v54 = vld [vmem:[%s285_s2 + $0x1] ss:$0 sm:$0xff] }
  0x17   :  { %60 = vmatpush.msra.mxu0 %v39_v14  ;;  %v119_v53 = vld [vmem:[#allocation2 + $0x100] sm:$0xff] }
  0x18   :  { %104 = vmatpush.msra.mxu1 %v82_v19  ;;  %143 = vmatpush.msra.mxu2 %v131_v36  ;;  %v188_v59 = vld [vmem:[%s285_s2 + $0x2] ss:$0 sm:$0xff] }
  0x19   :  { %61 = vmatpush.msra.mxu0 %v38_v16 }
  0x1a   :  { %105 = vmatpush.msra.mxu1 %v81_v21  ;;  %144 = vmatpush.msra.mxu2 %v130_v37 }
  0x1b   :  { %62 = vmatpush.msra.mxu0 %v37_v18 }
  0x1c   :  { %106 = vmatpush.msra.mxu1 %v80_v23  ;;  %145 = vmatpush.msra.mxu2 %v129_v38 }
  0x1d   :  { %63 = vmatpush.msra.mxu0 %v36_v20 }
  0x1e   :  { %107 = vmatpush.msra.mxu1 %v79_v25  ;;  %146 = vmatpush.msra.mxu2 %v128_v39 }
  0x1f   :  { %64 = vmatpush.msra.mxu0 %v35_v22 }
  0x20   :  { %108 = vmatpush.msra.mxu1 %v78_v29  ;;  %147 = vmatpush.msra.mxu2 %v127_v40 }
  0x21   :  { %65 = vmatpush.msra.mxu0 %v34_v24 }
  0x22   :  { %109 = vmatpush.msra.mxu1 %v77_v30  ;;  %148 = vmatpush.msra.mxu2 %v126_v41 }
  0x23   :  { %66 = vmatpush.msra.mxu0 %v33_v26 }
  0x24   :  { %110 = vmatpush.msra.mxu1 %v76_v31  ;;  %149 = vmatpush.msra.mxu2 %v125_v42 }
  0x25   :  { %67 = vmatpush.msra.mxu0 %v32_v27 }
  0x26   :  { %68 = vmatmul.f32.vlgmr.msra.gmra.mxu0 %v31_v28  ;;  %111 = vmatpush.msra.mxu1 %v75_v32 }
  0x27   :  { %150 = vmatpush.msra.mxu2 %v124_v43 }
  0x29   :  { %151 = vmatpush.msra.mxu2 %v123_v44 }
  0x2b   :  { %152 = vmatpush.msra.mxu2 %v122_v50 }
  0x2d   :  { %153 = vmatpush.msra.mxu2 %v121_v51 }
  0x2f   :  { %154 = vmatpush.msra.mxu2 %v120_v52 }
  0x31   :  { %155 = vmatpush.msra.mxu2 %v119_v53 }
  0xa3   :  { %v69_v46 = vpop.f32.mrf.mxu0 }
  0xa4   :  { %v70_v47 = vadd.f32 %v186_v45, %v69_v46 }
  0xa6   :  { %v72_v48 = vmul.f32 0.2, %v70_v47 }
  0xa8   :  { %v73_v49 = vmax.f32 %v70_v47, %v72_v48 }
  0xaa   :  { %112 = vmatmul.f32.vlgmr.msra.gmra.mxu1 %v73_v49 }
 0x127   :  { %v113_v55 = vpop.f32.mrf.mxu1 }
 0x128   :  { %v114_v56 = vadd.f32 %v187_v54, %v113_v55 }
 0x12a   :  { %v116_v57 = vmul.f32 0.2, %v114_v56 }
 0x12c   :  { %v117_v58 = vmax.f32 %v114_v56, %v116_v57 }
 0x12e   :  { %156 = vmatmul.f32.vlgmr.msra.gmra.mxu2 %v117_v58 }
 0x1b1   :  { %v157_v60 = vpop.f32.mrf.mxu2 }
 0x1b2   :  { %v158_v61 = vadd.f32 %v188_v59, %v157_v60 }
 0x1b4   :  { %v160_v62 = vmul.f32 0.2, %v158_v61 }
 0x1b6   :  { %v161_v63 = vmax.f32 %v158_v61, %v160_v62 }
 0x1b8   :  { %162 = vst [vmem:[#allocation5] sm:$0xff] %v161_v63 }
 0x1b9   :  { %173 = dma.vmem_to_hbm [thread:$0]  %s169_s26, 128, %s171_s29, [#allocation4]  }
 0x1ba   :  { %239 = dma.done.wait [#allocation4], 128  }
 0x1bb   :  { %240 = vsyncadd [#allocation4], 4294967168 }
 0x1bc   :  { %178 = vsyncpa [#allocation3], 1 }
 0x1bd   :  { %179 = vsyncpa [#allocation4], 1 }

</bundles_post_ra>
